<compile_context>
chip_gen: v7x
topology: tpu7x:2x2x1
jax: 0.10.0
libtpu: 0.0.40
codegen_flags: <defaults>
</compile_context>

<pallas_src>
import jax
import jax.numpy as jnp
from jax.experimental import pallas as pl
from jax.experimental.pallas import tpu as pltpu

# ---------------- model hyper-params (small, consistent with the module) ----
B = 2            # batch
L = 64           # sequence length (tokens)
C_IN = 4         # input_channels (DNA one-hot)
NF = 32          # n_filters
N_RES = 2        # n_residual_convs (dilations 1, 2)
K0 = 21          # first_kernel_size
KR = 3           # residual_kernel_size
OUT = 2          # output_size

L1 = L - K0 + 1                                      # 44: length after first conv
VALID = L1 - sum(2 * 2 ** i for i in range(N_RES))   # 38: length after residual stack
SPT = B                                              # samples per grid tile (1 tile here)
T = SPT * L                                          # stacked positions (lanes) per tile
MAX_SHIFT = (KR - 1) * 2 ** (N_RES - 1)              # 4: largest residual tap offset
PAD_L = max(8, MAX_SHIFT)                            # zero lanes at end of padded scratch

assert B % SPT == 0, "batch must tile evenly"
assert VALID >= 1, "sequence too short for this conv stack"
assert PAD_L >= MAX_SHIFT, "scratch pad must cover the largest tap shift"


def _cnn_kernel(r0_ref, w0_ref, b0_ref, wr_ref, br_ref, st_ref, wl_ref, bl_ref,
                o_ref, hp_ref):
    """One grid step = SPT samples, sequence-on-lanes layout.

    r0_ref : (K0*C_IN, T)       bf16  first-conv im2col (built in wrapper)
    w0_ref : (NF, K0*C_IN)      bf16  first conv weight, col = k*C_IN + c
    b0_ref : (NF, 1)            f32
    wr_ref : (N_RES, NF, KR*NF) bf16  residual weights, col = k*NF + cin
    br_ref : (N_RES, NF, 1)     f32
    st_ref : (T, SPT)           bf16  masked-mean matrix (1/VALID folded in)
    wl_ref : (OUT, NF)          bf16  output linear weight
    bl_ref : (OUT, 1)           f32
    o_ref  : (OUT, SPT)         f32   output, batch on lanes
    hp_ref : (NF, T+PAD_L)      f32   persistent lane-padded activation scratch
    """
    # Zero the pad lanes (cheap, done every step -> megacore-safe).
    hp_ref[:, T:T + PAD_L] = jnp.zeros((NF, PAD_L), jnp.float32)

    # ---- first conv (k=21, valid) as ONE bf16 MXU matmul + bias + ReLU -----
    h = jnp.dot(w0_ref[...], r0_ref[...], preferred_element_type=jnp.float32)
    h = jnp.maximum(h + b0_ref[...], 0.0)                          # (NF, T) f32

    # ---- dilated residual convs: one im2col matmul per layer ----------------
    # Taps are small static lane shifts of the padded scratch; the 3-tap stack
    # sits at sublane offsets 0/32/64 (aligned, cheap).
    for i in range(N_RES):
        d = 2 ** i
        hp_ref[:, :T] = h
        r = jnp.concatenate(
            [hp_ref[:, k * d:k * d + T] for k in range(KR)],
            axis=0).astype(jnp.bfloat16)                           # (KR*NF, T)
        hc = jnp.dot(wr_ref[i], r, preferred_element_type=jnp.float32)
        hc = jnp.maximum(hc + br_ref[i], 0.0)
        # residual: new[:, g] = old[:, g + d] + relu(conv)[:, g]  (== crop + add)
        h = hp_ref[:, d:d + T] + hc                                # (NF, T) f32

    # ---- per-sample masked mean folded into an MXU matmul -------------------
    pooled = jnp.dot(h.astype(jnp.bfloat16), st_ref[...],
                     preferred_element_type=jnp.float32)           # (NF, SPT)

    # ---- output head, lane-major (OUT, SPT) store ---------------------------
    out = jnp.dot(wl_ref[...], pooled.astype(jnp.bfloat16),
                  preferred_element_type=jnp.float32) + bl_ref[...]
    o_ref[...] = out.astype(o_ref.dtype)


def large_cnn_forward(embs, inds, params):
    """Pallas wrapper. `inds` is unused (matches _detokenize identity)."""
    del inds
    # TODO(synk): torch.cuda.synchronize() has no Pallas/TPU equivalent (no-op).
    w0, b0, wr, br, wl, bl = params  # PyTorch layouts (see init_params)

    # ---- wrapper-side layout prep (pure XLA, tiny) --------------------------
    # First-conv im2col, sequence-on-lanes: r0[k*C_IN + c, g] = x[g + k, c]
    xflat = embs.astype(jnp.float32).reshape(B * L, C_IN)
    xpad = jnp.concatenate([xflat, jnp.zeros((K0 - 1, C_IN), jnp.float32)], 0)
    taps = jnp.stack([xpad[k:k + B * L, :] for k in range(K0)], axis=0)
    r0 = taps.transpose(0, 2, 1).reshape(K0 * C_IN, B * L).astype(jnp.bfloat16)

    # Weights: flatten taps into the contraction dim, pre-cast to bf16.
    w0f = w0.transpose(0, 2, 1).reshape(NF, K0 * C_IN).astype(jnp.bfloat16)
    wrf = wr.transpose(0, 1, 3, 2).reshape(N_RES, NF, KR * NF).astype(jnp.bfloat16)
    b0c = b0.reshape(NF, 1).astype(jnp.float32)
    brc = br.reshape(N_RES, NF, 1).astype(jnp.float32)
    wlf = wl.astype(jnp.bfloat16)
    blc = bl.reshape(OUT, 1).astype(jnp.float32)

    # Constant per-sample masked-mean selection matrix (1/VALID folded in).
    g = jnp.arange(T)[:, None]
    s0 = jnp.arange(SPT)[None, :] * L
    s_t = jnp.where((g >= s0) & (g < s0 + VALID), 1.0 / VALID, 0.0)
    s_t = s_t.astype(jnp.bfloat16)                                 # (T, SPT)

    out_t = pl.pallas_call(
        _cnn_kernel,
        out_shape=jax.ShapeDtypeStruct((OUT, B), jnp.float32),
        grid_spec=pltpu.PrefetchScalarGridSpec(
            num_scalar_prefetch=0,
            grid=(B // SPT,),
            in_specs=[
                pl.BlockSpec((K0 * C_IN, T), lambda i: (0, i)),
                pl.BlockSpec((NF, K0 * C_IN), lambda i: (0, 0)),
                pl.BlockSpec((NF, 1), lambda i: (0, 0)),
                pl.BlockSpec((N_RES, NF, KR * NF), lambda i: (0, 0, 0)),
                pl.BlockSpec((N_RES, NF, 1), lambda i: (0, 0, 0)),
                pl.BlockSpec((T, SPT), lambda i: (0, 0)),
                pl.BlockSpec((OUT, NF), lambda i: (0, 0)),
                pl.BlockSpec((OUT, 1), lambda i: (0, 0)),
            ],
            out_specs=pl.BlockSpec((OUT, SPT), lambda i: (0, i)),
            scratch_shapes=[pltpu.VMEM((NF, T + PAD_L), jnp.float32)],
        ),
        compiler_params=pltpu.CompilerParams(
            dimension_semantics=("parallel",)),
    )(r0, w0f, b0c, wrf, brc, s_t, wlf, blc)
    return out_t.T                                                 # (B, OUT)


# ---------------- pure-JAX reference (PyTorch-layout weights) ---------------
def reference_forward(embs, params, bf16_matmul=False):
    """Reference forward. bf16_matmul=True mirrors the kernel's precision
    (bf16 matmul operands, f32 accumulation) so the comparison can be tight."""
    w0, b0, wr, br, wl, bl = params
    prec = "default" if bf16_matmul else "highest"

    def cast(a):
        return a.astype(jnp.bfloat16) if bf16_matmul else a.astype(jnp.float32)

    def conv1d(x_t, w, b, d):               # x_t: (Cin, Lx), w: (Cout, Cin, K)
        K = w.shape[-1]
        lo = x_t.shape[-1] - (K - 1) * d
        acc = jnp.zeros((w.shape[0], lo), jnp.float32)
        for k in range(K):
            acc = acc + jnp.dot(cast(w[:, :, k]), cast(x_t[:, k * d:k * d + lo]),
                                preferred_element_type=jnp.float32,
                                precision=prec)
        return acc + b[:, None]

    def one(x):                              # x: (L, C_IN)
        h = jnp.maximum(conv1d(x.astype(jnp.float32).T, w0, b0, 1), 0.0)
        for i in range(N_RES):
            d = 2 ** i
            hc = jnp.maximum(conv1d(h, wr[i], br[i], d), 0.0)
            h = h[:, d:-d] + hc
        lv = h.shape[-1]
        mean_w = jnp.full((lv, 1), 1.0 / lv, jnp.float32)
        m = jnp.dot(cast(h), cast(mean_w), preferred_element_type=jnp.float32,
                    precision=prec)[:, 0]
        return jnp.dot(cast(wl), cast(m), preferred_element_type=jnp.float32,
                       precision=prec) + bl

    return jax.vmap(one)(embs)


def init_params(key):
    ks = jax.random.split(key, 6)
    # PyTorch layouts: iconv.weight (NF, C_IN, K0), iconv.bias (NF,),
    # rconvs[i].weight (NF, NF, KR), rconvs[i].bias (NF,),
    # output_layer.weight (OUT, NF), output_layer.bias (OUT,)
    w0 = jax.random.normal(ks[0], (NF, C_IN, K0), jnp.float32) * 0.1
    b0 = jax.random.normal(ks[1], (NF,), jnp.float32) * 0.1
    wr = jax.random.normal(ks[2], (N_RES, NF, NF, KR), jnp.float32) * 0.1
    br = jax.random.normal(ks[3], (N_RES, NF), jnp.float32) * 0.1
    wl = jax.random.normal(ks[4], (OUT, NF), jnp.float32) * 0.1
    bl = jax.random.normal(ks[5], (OUT,), jnp.float32) * 0.1
    return (w0, b0, wr, br, wl, bl)


if __name__ == "__main__":
    key = jax.random.PRNGKey(0)
    k_x, k_p = jax.random.split(key)

    embs = jax.random.normal(k_x, (B, L, C_IN), jnp.float32)   # (batch, seq, channels)
    inds = jnp.arange(B * L, dtype=jnp.int32).reshape(B, L)    # unused, as in the module
    params = init_params(k_p)

    out = jax.block_until_ready(large_cnn_forward(embs, inds, params))
    assert out.shape == (B, OUT)

    # Tight check vs a reference that mirrors the kernel's bf16-operand /
    # f32-accumulate precision (differences reduce to accumulation order).
    ref_bf16 = reference_forward(embs, params, bf16_matmul=True)
    assert jnp.allclose(out, ref_bf16, atol=2e-3, rtol=2e-3), (out, ref_bf16)

    # Loose sanity check vs the full-f32 reference (bounds total bf16 error).
    ref_f32 = reference_forward(embs, params, bf16_matmul=False)
    assert jnp.allclose(out, ref_f32, atol=5e-2, rtol=5e-2), (out, ref_f32)

    print("KERNEL_OK")
</pallas_src>

<mosaic_0001>
module attributes {stable_mosaic.version = 11 : i64} {
  func.func @_cnn_kernel(%arg0: i32, %arg1: memref<84x128xbf16, #tpu.memory_space<vmem>>, %arg2: memref<32x84xbf16, #tpu.memory_space<vmem>>, %arg3: memref<32x1xf32, #tpu.memory_space<vmem>>, %arg4: memref<2x32x96xbf16, #tpu.memory_space<vmem>>, %arg5: memref<2x32x1xf32, #tpu.memory_space<vmem>>, %arg6: memref<128x2xbf16, #tpu.memory_space<vmem>>, %arg7: memref<2x32xbf16, #tpu.memory_space<vmem>>, %arg8: memref<2x1xf32, #tpu.memory_space<vmem>>, %arg9: memref<2x2xf32, #tpu.memory_space<vmem>>, %arg10: memref<32x136xf32, #tpu.memory_space<vmem>>) attributes {dimension_semantics = [#tpu.dimension_semantics<parallel>], iteration_bounds = array<i64: 1>, scalar_prefetch = 0 : i64, scratch_operands = 1 : i64, tpu.core_type = #tpu.core_type<tc>, window_params = [{transform_indices = @transform_0, window_bounds = array<i64: 84, 128>}, {pipeline_mode = #tpu.pipeline_mode<synchronous>, transform_indices = @transform_1, window_bounds = array<i64: 32, 84>}, {pipeline_mode = #tpu.pipeline_mode<synchronous>, transform_indices = @transform_2, window_bounds = array<i64: 32, 1>}, {pipeline_mode = #tpu.pipeline_mode<synchronous>, transform_indices = @transform_3, window_bounds = array<i64: 2, 32, 96>}, {pipeline_mode = #tpu.pipeline_mode<synchronous>, transform_indices = @transform_4, window_bounds = array<i64: 2, 32, 1>}, {pipeline_mode = #tpu.pipeline_mode<synchronous>, transform_indices = @transform_5, window_bounds = array<i64: 128, 2>}, {pipeline_mode = #tpu.pipeline_mode<synchronous>, transform_indices = @transform_6, window_bounds = array<i64: 2, 32>}, {pipeline_mode = #tpu.pipeline_mode<synchronous>, transform_indices = @transform_7, window_bounds = array<i64: 2, 1>}, {transform_indices = @transform_8, window_bounds = array<i64: 2, 2>}]} {
    %cst = arith.constant 0.000000e+00 : f32
    %0 = vector.broadcast %cst : f32 to vector<32x8xf32>
    %c0 = arith.constant 0 : index
    %c128 = arith.constant 128 : index
    %1 = vector.load %arg10[%c0, %c128] : memref<32x136xf32, #tpu.memory_space<vmem>>, vector<32x8xf32>
    tpu.vector_store %arg10[%c0, %c128], %0 {strides = array<i32>} : memref<32x136xf32, #tpu.memory_space<vmem>>, vector<32x8xf32>,
    %c0_0 = arith.constant 0 : index
    %c0_1 = arith.constant 0 : index
    %2 = vector.load %arg2[%c0_0, %c0_1] : memref<32x84xbf16, #tpu.memory_space<vmem>>, vector<32x84xbf16>
    %c0_2 = arith.constant 0 : index
    %c0_3 = arith.constant 0 : index
    %3 = vector.load %arg1[%c0_2, %c0_3] : memref<84x128xbf16, #tpu.memory_space<vmem>>, vector<84x128xbf16>
    %cst_4 = arith.constant dense<0.000000e+00> : vector<32x128xf32>
    %4 = tpu.matmul %2, %3, %cst_4 {dimension_numbers = #tpu.dot_dimension_numbers<[1], [0], [0], [1], [0, 0, 1, 1], [], []>} : vector<32x84xbf16>, vector<84x128xbf16>, vector<32x128xf32> -> vector<32x128xf32>
    %c0_5 = arith.constant 0 : index
    %c0_6 = arith.constant 0 : index
    %5 = vector.load %arg3[%c0_5, %c0_6] : memref<32x1xf32, #tpu.memory_space<vmem>>, vector<32x1xf32>
    %6 = vector.broadcast %5 : vector<32x1xf32> to vector<32x128xf32>
    %7 = arith.addf %4, %6 : vector<32x128xf32>
    %cst_7 = arith.constant 0.000000e+00 : f32
    %8 = vector.broadcast %cst_7 : f32 to vector<32x128xf32>
    %9 = arith.maximumf %7, %8 : vector<32x128xf32>
    %c0_8 = arith.constant 0 : index
    %c0_9 = arith.constant 0 : index
    %10 = vector.load %arg10[%c0_8, %c0_9] : memref<32x136xf32, #tpu.memory_space<vmem>>, vector<32x128xf32>
    tpu.vector_store %arg10[%c0_8, %c0_9], %9 {strides = array<i32>} : memref<32x136xf32, #tpu.memory_space<vmem>>, vector<32x128xf32>,
    %c0_10 = arith.constant 0 : index
    %c0_11 = arith.constant 0 : index
    %11 = vector.load %arg10[%c0_10, %c0_11] : memref<32x136xf32, #tpu.memory_space<vmem>>, vector<32x128xf32>
    %c0_12 = arith.constant 0 : index
    %c1 = arith.constant 1 : index
    %12 = vector.load %arg10[%c0_12, %c1] : memref<32x136xf32, #tpu.memory_space<vmem>>, vector<32x128xf32>
    %c0_13 = arith.constant 0 : index
    %c2 = arith.constant 2 : index
    %13 = vector.load %arg10[%c0_13, %c2] : memref<32x136xf32, #tpu.memory_space<vmem>>, vector<32x128xf32>
    %14 = tpu.concatenate %11, %12, %13 in 0 : vector<32x128xf32>, vector<32x128xf32>, vector<32x128xf32> -> vector<96x128xf32>
    %15 = arith.truncf %14 : vector<96x128xf32> to vector<96x128xbf16>
    %c0_14 = arith.constant 0 : index
    %c0_15 = arith.constant 0 : index
    %c0_16 = arith.constant 0 : index
    %16 = vector.load %arg4[%c0_14, %c0_15, %c0_16] : memref<2x32x96xbf16, #tpu.memory_space<vmem>>, vector<1x32x96xbf16>
    %17 = vector.shape_cast %16 : vector<1x32x96xbf16> to vector<32x96xbf16>
    %cst_17 = arith.constant dense<0.000000e+00> : vector<32x128xf32>
    %18 = tpu.matmul %17, %15, %cst_17 {dimension_numbers = #tpu.dot_dimension_numbers<[1], [0], [0], [1], [0, 0, 1, 1], [], []>} : vector<32x96xbf16>, vector<96x128xbf16>, vector<32x128xf32> -> vector<32x128xf32>
    %c0_18 = arith.constant 0 : index
    %c0_19 = arith.constant 0 : index
    %c0_20 = arith.constant 0 : index
    %19 = vector.load %arg5[%c0_18, %c0_19, %c0_20] : memref<2x32x1xf32, #tpu.memory_space<vmem>>, vector<1x32x1xf32>
    %20 = vector.shape_cast %19 : vector<1x32x1xf32> to vector<32x1xf32>
    %21 = vector.broadcast %20 : vector<32x1xf32> to vector<32x128xf32>
    %22 = arith.addf %18, %21 : vector<32x128xf32>
    %cst_21 = arith.constant 0.000000e+00 : f32
    %23 = vector.broadcast %cst_21 : f32 to vector<32x128xf32>
    %24 = arith.maximumf %22, %23 : vector<32x128xf32>
    %c0_22 = arith.constant 0 : index
    %c1_23 = arith.constant 1 : index
    %25 = vector.load %arg10[%c0_22, %c1_23] : memref<32x136xf32, #tpu.memory_space<vmem>>, vector<32x128xf32>
    %26 = arith.addf %25, %24 : vector<32x128xf32>
    %c0_24 = arith.constant 0 : index
    %c0_25 = arith.constant 0 : index
    %27 = vector.load %arg10[%c0_24, %c0_25] : memref<32x136xf32, #tpu.memory_space<vmem>>, vector<32x128xf32>
    tpu.vector_store %arg10[%c0_24, %c0_25], %26 {strides = array<i32>} : memref<32x136xf32, #tpu.memory_space<vmem>>, vector<32x128xf32>,
    %c0_26 = arith.constant 0 : index
    %c0_27 = arith.constant 0 : index
    %28 = vector.load %arg10[%c0_26, %c0_27] : memref<32x136xf32, #tpu.memory_space<vmem>>, vector<32x128xf32>
    %c0_28 = arith.constant 0 : index
    %c2_29 = arith.constant 2 : index
    %29 = vector.load %arg10[%c0_28, %c2_29] : memref<32x136xf32, #tpu.memory_space<vmem>>, vector<32x128xf32>
    %c0_30 = arith.constant 0 : index
    %c4 = arith.constant 4 : index
    %30 = vector.load %arg10[%c0_30, %c4] : memref<32x136xf32, #tpu.memory_space<vmem>>, vector<32x128xf32>
    %31 = tpu.concatenate %28, %29, %30 in 0 : vector<32x128xf32>, vector<32x128xf32>, vector<32x128xf32> -> vector<96x128xf32>
    %32 = arith.truncf %31 : vector<96x128xf32> to vector<96x128xbf16>
    %c1_31 = arith.constant 1 : index
    %c0_32 = arith.constant 0 : index
    %c0_33 = arith.constant 0 : index
    %33 = vector.load %arg4[%c1_31, %c0_32, %c0_33] : memref<2x32x96xbf16, #tpu.memory_space<vmem>>, vector<1x32x96xbf16>
    %34 = vector.shape_cast %33 : vector<1x32x96xbf16> to vector<32x96xbf16>
    %cst_34 = arith.constant dense<0.000000e+00> : vector<32x128xf32>
    %35 = tpu.matmul %34, %32, %cst_34 {dimension_numbers = #tpu.dot_dimension_numbers<[1], [0], [0], [1], [0, 0, 1, 1], [], []>} : vector<32x96xbf16>, vector<96x128xbf16>, vector<32x128xf32> -> vector<32x128xf32>
    %c1_35 = arith.constant 1 : index
    %c0_36 = arith.constant 0 : index
    %c0_37 = arith.constant 0 : index
    %36 = vector.load %arg5[%c1_35, %c0_36, %c0_37] : memref<2x32x1xf32, #tpu.memory_space<vmem>>, vector<1x32x1xf32>
    %37 = vector.shape_cast %36 : vector<1x32x1xf32> to vector<32x1xf32>
    %38 = vector.broadcast %37 : vector<32x1xf32> to vector<32x128xf32>
    %39 = arith.addf %35, %38 : vector<32x128xf32>
    %cst_38 = arith.constant 0.000000e+00 : f32
    %40 = vector.broadcast %cst_38 : f32 to vector<32x128xf32>
    %41 = arith.maximumf %39, %40 : vector<32x128xf32>
    %c0_39 = arith.constant 0 : index
    %c2_40 = arith.constant 2 : index
    %42 = vector.load %arg10[%c0_39, %c2_40] : memref<32x136xf32, #tpu.memory_space<vmem>>, vector<32x128xf32>
    %43 = arith.addf %42, %41 : vector<32x128xf32>
    %44 = arith.truncf %43 : vector<32x128xf32> to vector<32x128xbf16>
    %c0_41 = arith.constant 0 : index
    %c0_42 = arith.constant 0 : index
    %45 = vector.load %arg6[%c0_41, %c0_42] : memref<128x2xbf16, #tpu.memory_space<vmem>>, vector<128x2xbf16>
    %cst_43 = arith.constant dense<0.000000e+00> : vector<32x2xf32>
    %46 = tpu.matmul %44, %45, %cst_43 {dimension_numbers = #tpu.dot_dimension_numbers<[1], [0], [0], [1], [0, 0, 1, 1], [], []>} : vector<32x128xbf16>, vector<128x2xbf16>, vector<32x2xf32> -> vector<32x2xf32>
    %c0_44 = arith.constant 0 : index
    %c0_45 = arith.constant 0 : index
    %47 = vector.load %arg7[%c0_44, %c0_45] : memref<2x32xbf16, #tpu.memory_space<vmem>>, vector<2x32xbf16>
    %48 = arith.truncf %46 : vector<32x2xf32> to vector<32x2xbf16>
    %cst_46 = arith.constant dense<0.000000e+00> : vector<2x2xf32>
    %49 = tpu.matmul %47, %48, %cst_46 {dimension_numbers = #tpu.dot_dimension_numbers<[1], [0], [0], [1], [0, 0, 1, 1], [], []>} : vector<2x32xbf16>, vector<32x2xbf16>, vector<2x2xf32> -> vector<2x2xf32>
    %c0_47 = arith.constant 0 : index
    %c0_48 = arith.constant 0 : index
    %50 = vector.load %arg8[%c0_47, %c0_48] : memref<2x1xf32, #tpu.memory_space<vmem>>, vector<2x1xf32>
    %51 = vector.broadcast %50 : vector<2x1xf32> to vector<2x2xf32>
    %52 = arith.addf %49, %51 : vector<2x2xf32>
    %c0_49 = arith.constant 0 : index
    %c0_50 = arith.constant 0 : index
    %53 = vector.load %arg9[%c0_49, %c0_50] : memref<2x2xf32, #tpu.memory_space<vmem>>, vector<2x2xf32>
    tpu.vector_store %arg9[%c0_49, %c0_50], %52 {strides = array<i32>} : memref<2x2xf32, #tpu.memory_space<vmem>>, vector<2x2xf32>,
    return
  }
  func.func @transform_0(%arg0: i32) -> (i32, i32) {
    %c0_i32 = arith.constant 0 : i32
    %c0_i32_0 = arith.constant 0 : i32
    return %c0_i32, %arg0 : i32, i32
  }
  func.func @transform_1(%arg0: i32) -> (i32, i32) {
    %c0_i32 = arith.constant 0 : i32
    %c0_i32_0 = arith.constant 0 : i32
    %c0_i32_1 = arith.constant 0 : i32
    return %c0_i32, %c0_i32_0 : i32, i32
  }
  func.func @transform_2(%arg0: i32) -> (i32, i32) {
    %c0_i32 = arith.constant 0 : i32
    %c0_i32_0 = arith.constant 0 : i32
    %c0_i32_1 = arith.constant 0 : i32
    return %c0_i32, %c0_i32_0 : i32, i32
  }
  func.func @transform_3(%arg0: i32) -> (i32, i32, i32) {
    %c0_i32 = arith.constant 0 : i32
    %c0_i32_0 = arith.constant 0 : i32
    %c0_i32_1 = arith.constant 0 : i32
    %c0_i32_2 = arith.constant 0 : i32
    return %c0_i32, %c0_i32_0, %c0_i32_1 : i32, i32, i32
  }
  func.func @transform_4(%arg0: i32) -> (i32, i32, i32) {
    %c0_i32 = arith.constant 0 : i32
    %c0_i32_0 = arith.constant 0 : i32
    %c0_i32_1 = arith.constant 0 : i32
    %c0_i32_2 = arith.constant 0 : i32
    return %c0_i32, %c0_i32_0, %c0_i32_1 : i32, i32, i32
  }
  func.func @transform_5(%arg0: i32) -> (i32, i32) {
    %c0_i32 = arith.constant 0 : i32
    %c0_i32_0 = arith.constant 0 : i32
    %c0_i32_1 = arith.constant 0 : i32
    return %c0_i32, %c0_i32_0 : i32, i32
  }
  func.func @transform_6(%arg0: i32) -> (i32, i32) {
    %c0_i32 = arith.constant 0 : i32
    %c0_i32_0 = arith.constant 0 : i32
    %c0_i32_1 = arith.constant 0 : i32
    return %c0_i32, %c0_i32_0 : i32, i32
  }
  func.func @transform_7(%arg0: i32) -> (i32, i32) {
    %c0_i32 = arith.constant 0 : i32
    %c0_i32_0 = arith.constant 0 : i32
    %c0_i32_1 = arith.constant 0 : i32
    return %c0_i32, %c0_i32_0 : i32, i32
  }
  func.func @transform_8(%arg0: i32) -> (i32, i32) {
    %c0_i32 = arith.constant 0 : i32
    %c0_i32_0 = arith.constant 0 : i32
    return %c0_i32, %arg0 : i32, i32
  }
}

</mosaic_0001>

<bundles_post_ra>
// kernel: tpu_custom_call.1
= control target key start
LH: loop header
LB: loop body
LE: loop exit
PB: predicated region body
PF: predicated region fallthrough
CT: control target
= control target key end

     0   :  { %v1097_v2 = vmov 0   ;;  %vm118_vm0 = vcmask 687104   ;;  %vm125_vm1 = vcmask 1041408   ;;  %s1388_s0 = inlined_call_operand.vmem [shape: bf16[84,128], index: 0, kind: input, shape index: {}]   ;;  %s1389_s1 = inlined_call_operand.vmem [shape: bf16[32,84], index: 1, kind: input, shape index: {}]   ;;  %s1390_s2 = inlined_call_operand.vmem [shape: f32[32,1], index: 2, kind: input, shape index: {}]   ;;  %s1391_s3 = inlined_call_operand.vmem [shape: bf16[2,32,96], index: 3, kind: input, shape index: {}]   ;;  %s1392_s4 = inlined_call_operand.vmem [shape: f32[2,32,1], index: 4, kind: input, shape index: {}]   ;;  %s1393_s5 = inlined_call_operand.vmem [shape: bf16[128,2], index: 5, kind: input, shape index: {}]   ;;  %s1394_s6 = inlined_call_operand.vmem [shape: bf16[2,32], index: 6, kind: input, shape index: {}]   ;;  %s1395_s7 = inlined_call_operand.vmem [shape: f32[2,1], index: 7, kind: input, shape index: {}]   ;;  %s1396_s8 = inlined_call_operand.hbm [shape: f32[2,2], index: 8, kind: output, shape index: {}]  }
   0x1   :  { %v1053_v0 = vld [vmem:[%s1388_s0] sm:$0xff]   ;;  %v1054_v1 = vld [vmem:[%s1388_s0 + $0x8] sm:$0xff]   ;;  %971 = vset.pattern.permute.xlu0 %v1097_v2  ;;  %v1055_v3 = vld [vmem:[%s1388_s0 + $0x10] sm:$0xff]   ;;  %972 = vset.pattern.permute.xlu1 %v1097_v2 }
   0x2   :  { %885 = vmatprep.subr.bf16.mxu0 %v1053_v0  ;;  %v1059_v4 = vld [vmem:[%s1389_s1] sm:$0xff]   ;;  %v1056_v5 = vld [vmem:[%s1388_s0 + $0x18] sm:$0xff]   ;;  %v53_v7 = vld [vmem:[%s1390_s2 + $0x10] sm:$0xff] }
   0x3   :  { %886 = vmatpush3.bf16.msra.mxu0 %v1053_v0  ;;  %897 = vmatprep.mubr.msk.bf16.mxu0 %vm118_vm0, %v1059_v4  ;;  %v51_v6 = vld [vmem:[%s1390_s2] sm:$0xff]  ;;  %v52_v8 = vld [vmem:[%s1390_s2 + $0x8] sm:$0xff]  ;;  %v54_v9 = vld [vmem:[%s1390_s2 + $0x18] sm:$0xff] }
   0x4   :  { %887 = vmatprep.subr.bf16.mxu0 %v1054_v1  ;;  %57 = vperm.xlu0 %971, %v51_v6   ;;  %v1057_v10 = vld [vmem:[%s1388_s0 + $0x20] sm:$0xff]   ;;  %v1058_v11 = vld [vmem:[%s1388_s0 + $0x28] ss:$0 sps:$4 sm:$0x33]  }
   0x5   :  { %67 = vperm.xlu1 %972, %v53_v7  }
   0x7   :  { %888 = vmatpush3.bf16.msra.mxu0 %v1054_v1 }
   0x8   :  { %889 = vmatprep.subr.bf16.mxu0 %v1055_v3  ;;  %62 = vperm.xlu0 %971, %v52_v8  }
   0x9   :  { %72 = vperm.xlu1 %972, %v54_v9  }
   0xb   :  { %890 = vmatpush3.bf16.msra.mxu0 %v1055_v3 }
   0xc   :  { %891 = vmatprep.subr.bf16.mxu0 %v1056_v5 }
   0xf   :  { %892 = vmatpush3.bf16.msra.mxu0 %v1056_v5 }
  0x10   :  { %893 = vmatprep.subr.bf16.mxu0 %v1057_v10 }
  0x11   :  { %13 = vsyncpa [#allocation4], 0  ;;  %v127_v12 = vsel %vm125_vm1, %v1058_v11, 0  ;;  %v1060_v13 = vld [vmem:[%s1389_s1 + $0x8] sm:$0xff]   ;;  %vm31_vm2 = vcmask 64512   ;;  %v1098_v14 = vmov 0.0  }
  0x12   :  { %32 = vst.msk [vmem:[#allocation2 + $0x8] sm:$0xff] %vm31_vm2, %v1098_v14  ;;  %33 = vst.msk [vmem:[#allocation2 + $0x18] sm:$0xff] %vm31_vm2, %v1098_v14  ;;  %s1099_s0 = smov 127   ;;  %v1061_v41 = vld [vmem:[%s1391_s3] sm:$0xff]   ;;  %vm296_vm3 = vcmask 785408   ;;  %s1100_s29 = smov 126  }
  0x13   :  { %894 = vmatpush3.bf16.msra.mxu0 %v1057_v10  ;;  %34 = vst.msk [vmem:[#allocation2 + $0x28] sm:$0xff] %vm31_vm2, %v1098_v14  ;;  %35 = vst.msk [vmem:[#allocation2 + $0x38] sm:$0xff] %vm31_vm2, %v1098_v14  ;;  %913 = vmatprep.mubr.msk.bf16.mxu1 %vm296_vm3, %v1061_v41  ;;  %v262_v42 = vld [vmem:[%s1392_s4] sm:$0xff]  ;;  %v263_v43 = vld [vmem:[%s1392_s4 + $0x8] sm:$0xff]  ;;  %vm218_vm4 = vcmask 1039360   ;;  %vm243_vm5 = vcmask 1031168  }
  0x14   :  { %961 = vmatprep.subr.msk.bf16.mxu0 %vm125_vm1, %v1058_v11  ;;  %v264_v44 = vld [vmem:[%s1392_s4 + $0x10] sm:$0xff]  ;;  %v265_v45 = vld [vmem:[%s1392_s4 + $0x18] sm:$0xff]  ;;  %s1101_s18 = smov 1   ;;  %s1102_s19 = smov 124   ;;  %vm472_vm6 = vcmask 1014784   ;;  %vm1104_vm7 = vmmov 0  }
  0x15   :  { %vm753_vm8 = vcmask 261120   ;;  %s1105_s24 = smov [#allocation3]   ;;  %vm797_vm9 = vcmask 9216  }
  0x16   :  { %s805_s25 = sshll.u32 %s1105_s24, 4  ;;  %s806_s25 = int_to_ptr.vmem [resolvable:$true] %s805_s25 }
  0x17   :  { %896 = vmatpush3.bf16.msra.mxu0 %v127_v12  ;;  %s1073_s26 = scalar_lea.vmem %s806_s25, 32  ;;  %p1078_p1 = scmp.lt.s32.totalorder %s806_s25, %s806_s25 }
  0x18   :  { %p1074_p0 = scmp.ne.s32.totalorder %s806_s25, %s1073_s26  ;;  %p1079_p2 = scmp.lt.s32.totalorder %s1073_s26, %s1073_s26 }
  0x19   :  { %v1193_v26 = vld [vmem:[#allocation2 + $0x8] sm:$0xff]  ;;  %v1197_v29 = vld [vmem:[#allocation2 + $0x18] sm:$0xff] }
  0x1a   :  { %898 = vmatmul.mubr.msk.bf16.vlgmr.msra.gmra.mrb[0].mxu0 %vm118_vm0, %v1060_v13  ;;  %v1207_v34 = vld [vmem:[#allocation2 + $0x28] sm:$0xff]  ;;  %v1214_v37 = vld [vmem:[#allocation2 + $0x38] sm:$0xff]  ;;  %p1080_p3 = por %p1079_p2, %p1078_p1 }
  0x1c   :  { %p1081_p4 = pnand %p1080_p3, %p1074_p0 }
  0x83   :  { %v58_v16 = vpop.permute.xlu0 %57 }
  0x84   :  { %v68_v15 = vpop.permute.xlu1 %67 }
  0x87   :  { %v63_v23 = vpop.permute.xlu0 %62 }
  0x88   :  { %v73_v18 = vpop.permute.xlu1 %72 }
  0xed   :  { %v899_v17 = vpop.f32.mrb[0].mxu0 }
  0xee   :  { %v163_v19 = vpop.f32.mrb[1].mxu0  ;;  %v172_v20 = vadd.f32 %v899_v17, %v68_v15 }
  0xef   :  { %v164_v21 = vadd.f32 %v163_v19, %v58_v16  ;;  %v900_v22 = vpop.f32.mrb[2].mxu0  ;;  %v1062_v19 = vld [vmem:[%s1391_s3 + $0x8] sm:$0xff]  }
  0xf0   :  { %v175_v24 = vadd.f32 %v900_v22, %v73_v18  ;;  %v166_v25 = vpop.f32.mrb[3].mxu0  ;;  %v1199_v30 = vmax.f32 %v172_v20, 0.0 }
  0xf1   :  { %v1195_v27 = vmax.f32 %v164_v21, 0.0  ;;  %v167_v28 = vadd.f32 %v166_v25, %v63_v23 }
  0xf2   :  { %v1201_v31 = vmax.f32 %v175_v24, 0.0  ;;  %v978_v39 = vpack.i.bf16 %v1207_v34, %v1199_v30 }
  0xf3   :  { %v1203_v32 = vmax.f32 %v167_v28, 0.0  ;;  %v973_v33 = vpack.i.bf16 %v1193_v26, %v1195_v27 }
  0xf4   :  { %v253_v38 = vpack.c.bf16 %v1201_v31, %v1199_v30  ;;  %v988_v40 = vpack.i.bf16 %v1214_v37, %v1201_v31 }
  0xf5   :  { %974 = vrot.lane.b32.xlu0 %v973_v33, %s1099_s0  ;;  %v252_v35 = vpack.c.bf16 %v1203_v32, %v1195_v27  ;;  %v983_v36 = vpack.i.bf16 %v1197_v29, %v1203_v32 }
  0xf7   :  { %901 = vmatprep.subr.bf16.mxu1 %v252_v35  ;;  %984 = vrot.lane.b32.xlu1 %v983_v36, %s1099_s0 }
  0xf8   :  { %902 = vmatpush3.bf16.msra.mxu1 %v252_v35 }
  0xf9   :  { %903 = vmatprep.subr.bf16.mxu1 %v253_v38  ;;  %979 = vrot.lane.b32.xlu0 %v978_v39, %s1099_s0 }
  0xfb   :  { %989 = vrot.lane.b32.xlu1 %v988_v40, %s1099_s0 }
  0xfc   :  { %904 = vmatpush3.bf16.msra.mxu1 %v253_v38 }
  0xfd   :  { %994 = vrot.lane.b32.xlu0 %v973_v33, %s1100_s29 }
  0xff   :  { %1004 = vrot.lane.b32.xlu1 %v983_v36, %s1100_s29 }
 0x101   :  { %999 = vrot.lane.b32.xlu0 %v978_v39, %s1100_s29 }
 0x103   :  { %1009 = vrot.lane.b32.xlu1 %v988_v40, %s1100_s29 }
 0x105   :  { %268 = vperm.xlu0 %971, %v262_v42  }
 0x107   :  { %273 = vperm.xlu1 %972, %v263_v43  }
 0x109   :  { %278 = vperm.xlu0 %971, %v264_v44  }
 0x10b   :  { %283 = vperm.xlu1 %972, %v265_v45  }
 0x167   :  { %v975_v46 = vpop.permute.xlu0 %974 }
 0x168   :  { %v977_v47 = vunpack.i.h.bf16 %v975_v46  ;;  %v976_v48 = vunpack.i.l.bf16 %v975_v46 }
 0x169   :  { %v985_v49 = vpop.permute.xlu1 %984 }
 0x16a   :  { %v987_v50 = vunpack.i.h.bf16 %v985_v49  ;;  %v986_v51 = vunpack.i.l.bf16 %v985_v49  ;;  %v219_v55 = vsel %vm218_vm4, %v976_v48, %v977_v47 }
 0x16b   :  { %v980_v52 = vpop.permute.xlu0 %979 }
 0x16c   :  { %v982_v53 = vunpack.i.h.bf16 %v980_v52  ;;  %v981_v54 = vunpack.i.l.bf16 %v980_v52  ;;  %v220_v56 = vsel %vm218_vm4, %v986_v51, %v987_v50 }
 0x16d   :  { %v990_v57 = vpop.permute.xlu1 %989  ;;  %v254_v58 = vpack.c.bf16 %v220_v56, %v219_v55 }
 0x16e   :  { %v992_v59 = vunpack.i.h.bf16 %v990_v57  ;;  %v991_v60 = vunpack.i.l.bf16 %v990_v57  ;;  %v221_v0 = vsel %vm218_vm4, %v981_v54, %v982_v53 }
 0x16f   :  { %v995_v61 = vpop.permute.xlu0 %994  ;;  %905 = vmatprep.subr.bf16.mxu1 %v254_v58 }
 0x170   :  { %v997_v62 = vunpack.i.h.bf16 %v995_v61  ;;  %v996_v63 = vunpack.i.l.bf16 %v995_v61  ;;  %906 = vmatpush3.bf16.msra.mxu1 %v254_v58  ;;  %v222_v1 = vsel %vm218_vm4, %v991_v60, %v992_v59 }
 0x171   :  { %v1005_v2 = vpop.permute.xlu1 %1004  ;;  %v255_v3 = vpack.c.bf16 %v222_v1, %v221_v0 }
 0x172   :  { %v1007_v4 = vunpack.i.h.bf16 %v1005_v2  ;;  %v1006_v5 = vunpack.i.l.bf16 %v1005_v2  ;;  %v244_v9 = vsel %vm243_vm5, %v996_v63, %v997_v62 }
 0x173   :  { %v1000_v6 = vpop.permute.xlu0 %999  ;;  %907 = vmatprep.subr.bf16.mxu1 %v255_v3 }
 0x174   :  { %v1002_v7 = vunpack.i.h.bf16 %v1000_v6  ;;  %v1001_v8 = vunpack.i.l.bf16 %v1000_v6  ;;  %908 = vmatpush3.bf16.msra.mxu1 %v255_v3  ;;  %v245_v10 = vsel %vm243_vm5, %v1006_v5, %v1007_v4  ;;  %v1063_v6 = vld [vmem:[%s1391_s3 + $0x10] sm:$0xff]  }
 0x175   :  { %v1010_v11 = vpop.permute.xlu1 %1009  ;;  %v256_v12 = vpack.c.bf16 %v245_v10, %v244_v9  ;;  %929 = vmatprep.mubr.msk.bf16.mxu0 %vm296_vm3, %v1063_v6  ;;  %v832_v9 = vld [vmem:[%s1392_s4 + $0x28] sm:$0xff]  ;;  %v834_v10 = vld [vmem:[%s1392_s4 + $0x38] sm:$0xff] }
 0x176   :  { %v1012_v13 = vunpack.i.h.bf16 %v1010_v11  ;;  %v1011_v15 = vunpack.i.l.bf16 %v1010_v11  ;;  %v246_v16 = vsel %vm243_vm5, %v1001_v8, %v1002_v7  ;;  %v831_v7 = vld [vmem:[%s1392_s4 + $0x20] sm:$0xff]  ;;  %v833_v8 = vld [vmem:[%s1392_s4 + $0x30] sm:$0xff] }
 0x177   :  { %909 = vmatprep.subr.bf16.mxu1 %v256_v12 }
 0x178   :  { %910 = vmatpush3.bf16.msra.mxu1 %v256_v12  ;;  %v247_v17 = vsel %vm243_vm5, %v1011_v15, %v1012_v13 }
 0x179   :  { %v257_v18 = vpack.c.bf16 %v247_v17, %v246_v16 }
 0x17b   :  { %911 = vmatprep.subr.bf16.mxu1 %v257_v18 }
 0x17c   :  { %912 = vmatpush3.bf16.msra.mxu1 %v257_v18 }
 0x17f   :  { %914 = vmatmul.mubr.msk.bf16.vlgmr.msra.gmra.mrb[0].mxu1 %vm296_vm3, %v1062_v19 }
 0x184   :  { %v269_v20 = vpop.permute.xlu0 %268 }
 0x186   :  { %v274_v21 = vpop.permute.xlu1 %273 }
 0x188   :  { %v279_v28 = vpop.permute.xlu0 %278 }
 0x18a   :  { %v284_v39 = vpop.permute.xlu1 %283 }
 0x252   :  { %v915_v22 = vpop.f32.mrb[0].mxu1 }
 0x253   :  { %v337_v23 = vpop.f32.mrb[1].mxu1  ;;  %v346_v35 = vadd.f32 %v915_v22, %v279_v28 }
 0x254   :  { %v338_v24 = vadd.f32 %v337_v23, %v269_v20  ;;  %v916_v25 = vpop.f32.mrb[2].mxu1 }
 0x255   :  { %v340_v33 = vpop.f32.mrb[3].mxu1  ;;  %v349_v40 = vadd.f32 %v916_v25, %v284_v39  ;;  %v354_v42 = vmax.f32 %v346_v35, 0.0 }
 0x256   :  { %v352_v36 = vmax.f32 %v338_v24, 0.0  ;;  %v341_v38 = vadd.f32 %v340_v33, %v274_v21 }
 0x257   :  { %v355_v43 = vmax.f32 %v349_v40, 0.0 }
 0x258   :  { %v353_v41 = vmax.f32 %v341_v38, 0.0  ;;  %360 = vrot.lane.b32.xlu0 %v352_v36, %s1101_s18 }
 0x25a   :  { %362 = vrot.lane.b32.xlu1 %v353_v41, %s1101_s18 }
 0x25c   :  { %364 = vrot.lane.b32.xlu0 %v354_v42, %s1101_s18 }
 0x25e   :  { %366 = vrot.lane.b32.xlu1 %v355_v43, %s1101_s18 }
 0x2ca   :  { %v361_v44 = vpop.permute.xlu0 %360 }
 0x2cb   :  { %v372_v49 = vadd.f32 %v361_v44, %v1195_v27  ;;  %v373_v50 = vadd.f32 %v361_v44, %v1193_v26 }
 0x2cc   :  { %v363_v48 = vpop.permute.xlu1 %362 }
 0x2cd   :  { %v374_v51 = vadd.f32 %v363_v48, %v1203_v32  ;;  %v375_v52 = vadd.f32 %v363_v48, %v1197_v29 }
 0x2ce   :  { %v365_v45 = vpop.permute.xlu0 %364 }
 0x2cf   :  { %v376_v46 = vadd.f32 %v365_v45, %v1199_v30  ;;  %v377_v47 = vadd.f32 %v365_v45, %v1207_v34 }
 0x2d0   :  { %v367_v30 = vpop.permute.xlu1 %366 }
 0x2d1   :  { %398 = vrot.lane.b32.xlu1 %v377_v47, %s1099_s0  ;;  %396 = vrot.lane.b32.xlu0 %v376_v46, %s1099_s0  ;;  %v378_v53 = vadd.f32 %v367_v30, %v1201_v31  ;;  %v379_v54 = vadd.f32 %v367_v30, %v1214_v37 }
 0x2d5   :  { %390 = vrot.lane.b32.xlu1 %v373_v50, %s1099_s0  ;;  %388 = vrot.lane.b32.xlu0 %v372_v49, %s1099_s0 }
 0x2d9   :  { %394 = vrot.lane.b32.xlu1 %v375_v52, %s1099_s0  ;;  %392 = vrot.lane.b32.xlu0 %v374_v51, %s1099_s0 }
 0x2dd   :  { %402 = vrot.lane.b32.xlu1 %v379_v54, %s1099_s0  ;;  %400 = vrot.lane.b32.xlu0 %v378_v53, %s1099_s0 }
 0x343   :  { %v399_v27 = vpop.permute.xlu1 %398  ;;  %v397_v55 = vpop.permute.xlu0 %396 }
 0x344   :  { %v1274_v56 = vsel %vm218_vm4, %v397_v55, %v399_v27  ;;  %v1064_v27 = vld [vmem:[%s1391_s3 + $0x18] sm:$0xff]   ;;  %s1103_s3 = smov 2  }
 0x345   :  { %v1018_v62 = vpack.i.bf16 %v1207_v34, %v1274_v56 }
 0x347   :  { %v391_v32 = vpop.permute.xlu1 %390  ;;  %v389_v57 = vpop.permute.xlu0 %388 }
 0x348   :  { %v1277_v58 = vsel %vm218_vm4, %v389_v57, %v391_v32 }
 0x349   :  { %v1013_v59 = vpack.i.bf16 %v1193_v26, %v1277_v58 }
 0x34b   :  { %v395_v31 = vpop.permute.xlu1 %394  ;;  %v393_v60 = vpop.permute.xlu0 %392  ;;  %1014 = vrot.lane.b32.xlu0 %v1013_v59, %s1100_s29 }
 0x34c   :  { %v1283_v61 = vsel %vm218_vm4, %v393_v60, %v395_v31 }
 0x34d   :  { %v1023_v63 = vpack.i.bf16 %v1197_v29, %v1283_v61  ;;  %v481_v0 = vpack.c.bf16 %v1283_v61, %v1277_v58 }
 0x34f   :  { %v403_v1 = vpop.permute.xlu1 %402  ;;  %v401_v2 = vpop.permute.xlu0 %400  ;;  %1019 = vrot.lane.b32.xlu0 %v1018_v62, %s1100_s29  ;;  %1024 = vrot.lane.b32.xlu1 %v1023_v63, %s1100_s29 }
 0x350   :  { %v1294_v3 = vsel %vm218_vm4, %v401_v2, %v403_v1  ;;  %917 = vmatprep.subr.bf16.mxu0 %v481_v0 }
 0x351   :  { %918 = vmatpush3.bf16.msra.mxu0 %v481_v0  ;;  %v1028_v4 = vpack.i.bf16 %v1214_v37, %v1294_v3  ;;  %v482_v5 = vpack.c.bf16 %v1294_v3, %v1274_v56 }
 0x353   :  { %1034 = vrot.lane.b32.xlu0 %v1013_v59, %s1102_s19  ;;  %1029 = vrot.lane.b32.xlu1 %v1028_v4, %s1100_s29 }
 0x354   :  { %919 = vmatprep.subr.bf16.mxu0 %v482_v5 }
 0x355   :  { %920 = vmatpush3.bf16.msra.mxu0 %v482_v5 }
 0x357   :  { %1039 = vrot.lane.b32.xlu0 %v1018_v62, %s1102_s19  ;;  %1044 = vrot.lane.b32.xlu1 %v1023_v63, %s1102_s19 }
 0x35b   :  { %499 = vperm.xlu0 %971, %v831_v7   ;;  %1049 = vrot.lane.b32.xlu1 %v1028_v4, %s1102_s19  ;;  %v1065_v7 = vld [vmem:[%s1393_s5] sm:$0xff]  }
 0x35c   :  { %933 = vmatprep.subr.bf16.mxu1 %v1065_v7 }
 0x35d   :  { %934 = vmatpush3.bf16.msra.mxu1 %v1065_v7 }
 0x35f   :  { %509 = vperm.xlu0 %971, %v833_v8   ;;  %504 = vperm.xlu1 %972, %v832_v9   ;;  %v1066_v8 = vld [vmem:[%s1393_s5 + $0x8] sm:$0xff]  }
 0x360   :  { %935 = vmatprep.subr.bf16.mxu1 %v1066_v8 }
 0x361   :  { %936 = vmatpush3.bf16.msra.mxu1 %v1066_v8 }
 0x363   :  { %514 = vperm.xlu1 %972, %v834_v10  }
 0x3bd   :  { %v1015_v11 = vpop.permute.xlu0 %1014 }
 0x3be   :  { %v1017_v12 = vunpack.i.h.bf16 %v1015_v11  ;;  %v1016_v13 = vunpack.i.l.bf16 %v1015_v11  ;;  %v1067_v11 = vld [vmem:[%s1393_s5 + $0x10] sm:$0xff]  }
 0x3bf   :  { %937 = vmatprep.subr.bf16.mxu1 %v1067_v11 }
 0x3c0   :  { %v448_v21 = vsel %vm243_vm5, %v1016_v13, %v1017_v12  ;;  %v1068_v12 = vld [vmem:[%s1393_s5 + $0x18] sm:$0xff]   ;;  %938 = vmatpush3.bf16.msra.mxu1 %v1067_v11  ;;  %v1069_v13 = vld [vmem:[%s1393_s5 + $0x20] sm:$0xff]  }
 0x3c1   :  { %v1025_v15 = vpop.permute.xlu1 %1024  ;;  %v1020_v16 = vpop.permute.xlu0 %1019  ;;  %939 = vmatprep.subr.bf16.mxu1 %v1068_v12 }
 0x3c2   :  { %v1027_v17 = vunpack.i.h.bf16 %v1025_v15  ;;  %v1026_v18 = vunpack.i.l.bf16 %v1025_v15  ;;  %v1022_v19 = vunpack.i.h.bf16 %v1020_v16  ;;  %v1021_v20 = vunpack.i.l.bf16 %v1020_v16  ;;  %v1070_v15 = vld [vmem:[%s1393_s5 + $0x28] sm:$0xff]   ;;  %v1071_v16 = vld [vmem:[%s1393_s5 + $0x30] sm:$0xff]  }
 0x3c4   :  { %v449_v22 = vsel %vm243_vm5, %v1026_v18, %v1027_v17  ;;  %v450_v38 = vsel %vm243_vm5, %v1021_v20, %v1022_v19  ;;  %940 = vmatpush3.bf16.msra.mxu1 %v1068_v12  ;;  %v1072_v17 = vld [vmem:[%s1393_s5 + $0x38] sm:$0xff]  }
 0x3c5   :  { %v1030_v23 = vpop.permute.xlu1 %1029  ;;  %v1035_v24 = vpop.permute.xlu0 %1034  ;;  %v483_v25 = vpack.c.bf16 %v449_v22, %v448_v21  ;;  %941 = vmatprep.subr.bf16.mxu1 %v1069_v13 }
 0x3c6   :  { %v1032_v28 = vunpack.i.h.bf16 %v1030_v23  ;;  %v1031_v33 = vunpack.i.l.bf16 %v1030_v23  ;;  %v1037_v35 = vunpack.i.h.bf16 %v1035_v24  ;;  %v1036_v36 = vunpack.i.l.bf16 %v1035_v24 }
 0x3c7   :  { %921 = vmatprep.subr.bf16.mxu0 %v483_v25 }
 0x3c8   :  { %922 = vmatpush3.bf16.msra.mxu0 %v483_v25  ;;  %v451_v39 = vsel %vm243_vm5, %v1031_v33, %v1032_v28  ;;  %v473_v47 = vsel %vm472_vm6, %v1036_v36, %v1037_v35  ;;  %942 = vmatpush3.bf16.msra.mxu1 %v1069_v13 }
 0x3c9   :  { %v1045_v40 = vpop.permute.xlu1 %1044  ;;  %v1040_v41 = vpop.permute.xlu0 %1039  ;;  %v484_v42 = vpack.c.bf16 %v451_v39, %v450_v38  ;;  %943 = vmatprep.subr.bf16.mxu1 %v1070_v15 }
 0x3ca   :  { %v1047_v43 = vunpack.i.h.bf16 %v1045_v40  ;;  %v1046_v44 = vunpack.i.l.bf16 %v1045_v40  ;;  %v1042_v45 = vunpack.i.h.bf16 %v1040_v41  ;;  %v1041_v46 = vunpack.i.l.bf16 %v1040_v41 }
 0x3cb   :  { %923 = vmatprep.subr.bf16.mxu0 %v484_v42 }
 0x3cc   :  { %924 = vmatpush3.bf16.msra.mxu0 %v484_v42  ;;  %v474_v48 = vsel %vm472_vm6, %v1046_v44, %v1047_v43  ;;  %v475_v30 = vsel %vm472_vm6, %v1041_v46, %v1042_v45  ;;  %944 = vmatpush3.bf16.msra.mxu1 %v1070_v15 }
 0x3cd   :  { %v1050_v49 = vpop.permute.xlu1 %1049  ;;  %v485_v50 = vpack.c.bf16 %v474_v48, %v473_v47  ;;  %945 = vmatprep.subr.bf16.mxu1 %v1071_v16  ;;  %v744_v47 = vld [vmem:[%s1394_s6] sm:$0x1] }
 0x3ce   :  { %v1052_v51 = vunpack.i.h.bf16 %v1050_v49  ;;  %v1051_v52 = vunpack.i.l.bf16 %v1050_v49 }
 0x3cf   :  { %925 = vmatprep.subr.bf16.mxu0 %v485_v50 }
 0x3d0   :  { %926 = vmatpush3.bf16.msra.mxu0 %v485_v50  ;;  %v476_v53 = vsel %vm472_vm6, %v1051_v52, %v1052_v51  ;;  %946 = vmatpush3.bf16.msra.mxu1 %v1071_v16 }
 0x3d1   :  { %v486_v54 = vpack.c.bf16 %v476_v53, %v475_v30  ;;  %947 = vmatprep.subr.bf16.mxu1 %v1072_v17 }
 0x3d3   :  { %927 = vmatprep.subr.bf16.mxu0 %v486_v54 }
 0x3d4   :  { %928 = vmatpush3.bf16.msra.mxu0 %v486_v54  ;;  %948 = vmatpush3.bf16.msra.mxu1 %v1072_v17 }
 0x3d5   :  { %953 = vmatprep.subr.bf16.mxu0 %v1098_v14 }
 0x3d7   :  { %930 = vmatmul.mubr.msk.bf16.vlgmr.msra.gmra.mrb[4].mxu0 %vm296_vm3, %v1064_v27 }
 0x3d8   :  { %957 = vmatprep.mubr.msk.bf16.mxu0 %vm1104_vm7, %v1098_v14 }
 0x3da   :  { %v500_v55 = vpop.permute.xlu0 %499 }
 0x3de   :  { %v505_v32 = vpop.permute.xlu1 %504  ;;  %v510_v62 = vpop.permute.xlu0 %509 }
 0x3e2   :  { %v515_v4 = vpop.permute.xlu1 %514 }
 0x4aa   :  { %v931_v57 = vpop.f32.mrb[4].mxu0 }
 0x4ab   :  { %v567_v59 = vpop.f32.mrb[5].mxu0  ;;  %v576_v0 = vadd.f32 %v931_v57, %v510_v62 }
 0x4ac   :  { %v568_v31 = vadd.f32 %v567_v59, %v500_v55  ;;  %v932_v60 = vpop.f32.mrb[6].mxu0 }
 0x4ad   :  { %v570_v63 = vpop.f32.mrb[7].mxu0  ;;  %v579_v5 = vadd.f32 %v932_v60, %v515_v4  ;;  %v584_v9 = vmax.f32 %v576_v0, 0.0 }
 0x4ae   :  { %v582_v1 = vmax.f32 %v568_v31, 0.0  ;;  %v571_v2 = vadd.f32 %v570_v63, %v505_v32 }
 0x4af   :  { %v585_v10 = vmax.f32 %v579_v5, 0.0 }
 0x4b0   :  { %v583_v6 = vmax.f32 %v571_v2, 0.0  ;;  %590 = vrot.lane.b32.xlu0 %v582_v1, %s1103_s3 }
 0x4b2   :  { %592 = vrot.lane.b32.xlu1 %v583_v6, %s1103_s3 }
 0x4b4   :  { %594 = vrot.lane.b32.xlu0 %v584_v9, %s1103_s3 }
 0x4b6   :  { %596 = vrot.lane.b32.xlu1 %v585_v10, %s1103_s3 }
 0x522   :  { %v591_v18 = vpop.permute.xlu0 %590 }
 0x523   :  { %v602_v20 = vadd.f32 %v591_v18, %v1277_v58  ;;  %v603_v21 = vadd.f32 %v591_v18, %v1193_v26 }
 0x524   :  { %v593_v19 = vpop.permute.xlu1 %592 }
 0x525   :  { %v604_v22 = vadd.f32 %v593_v19, %v1283_v61  ;;  %v605_v23 = vadd.f32 %v593_v19, %v1197_v29  ;;  %v747_v29 = vld [vmem:[%s1395_s7] sm:$0x3] }
 0x526   :  { %v595_v24 = vpop.permute.xlu0 %594 }
 0x527   :  { %v610_v25 = vpack.c.bf16 %v604_v22, %v602_v20  ;;  %v611_v28 = vpack.c.bf16 %v605_v23, %v603_v21  ;;  %v606_v33 = vadd.f32 %v595_v24, %v1274_v56  ;;  %v607_v36 = vadd.f32 %v595_v24, %v1207_v34 }
 0x528   :  { %v597_v35 = vpop.permute.xlu1 %596 }
 0x529   :  { %v608_v38 = vadd.f32 %v597_v35, %v1294_v3  ;;  %v609_v39 = vadd.f32 %v597_v35, %v1214_v37  ;;  %636 = vrot.lane.b32.xlu1 %v611_v28, %s1100_s29  ;;  %634 = vrot.lane.b32.xlu0 %v610_v25, %s1100_s29 }
 0x52b   :  { %v612_v26 = vpack.c.bf16 %v608_v38, %v606_v33  ;;  %v613_v58 = vpack.c.bf16 %v609_v39, %v607_v36 }
 0x52d   :  { %640 = vrot.lane.b32.xlu1 %v613_v58, %s1100_s29  ;;  %638 = vrot.lane.b32.xlu0 %v612_v26, %s1100_s29 }
 0x531   :  { %750 = vperm.xlu0 %971, %v747_v29  }
 0x59b   :  { %v637_v34 = vpop.permute.xlu1 %636  ;;  %v635_v56 = vpop.permute.xlu0 %634 }
 0x59c   :  { %v643_v61 = vsel %vm243_vm5, %v635_v56, %v637_v34 }
 0x59d   :  { %949 = vmatprep.mubr.bf16.mxu1 %v643_v61 }
 0x59f   :  { %v641_v37 = vpop.permute.xlu1 %640  ;;  %v639_v3 = vpop.permute.xlu0 %638 }
 0x5a0   :  { %v644_v40 = vsel %vm243_vm5, %v639_v3, %v641_v37 }
 0x5a1   :  { %950 = vmatmul.mubr.bf16.vlgmr.msra.gmra.mrb[4].mxu1 %v644_v40 }
 0x5b0   :  { %v751_v48 = vpop.permute.xlu0 %750 }
 0x674   :  { %v951_v41 = vpop.f32.mrb[4].mxu1 }
 0x675   :  { %v729_v42 = vpop.f32.mrb[5].mxu1 }
 0x676   :  { %v952_v43 = vpop.f32.mrb[6].mxu1 }
 0x677   :  { %v746_v44 = vpack.c.bf16 %v952_v43, %v951_v41  ;;  %v732_v45 = vpop.f32.mrb[7].mxu1 }
 0x678   :  { %v745_v46 = vpack.c.bf16 %v732_v45, %v729_v42 }
 0x67a   :  { %954 = vmatpush3.bf16.msra.mxu0 %v745_v46 }
 0x67b   :  { %955 = vmatprep.subr.bf16.mxu0 %v1098_v14 }
 0x67e   :  { %956 = vmatpush3.bf16.msra.mxu0 %v746_v44 }
 0x681   :  { %958 = vmatmul.mubr.msk.bf16.vlgmr.msra.gmra.mrb[8].mxu0 %vm753_vm8, %v744_v47 }
 0x754   :  { %v791_v49 = vpop.f32.mrb[8].mxu0 }
 0x755   :  { %v792_v50 = vadd.f32 %v791_v49, %v751_v48  ;;  %v959_v51 = vpop.f32.mrb[9].mxu0 }
 0x756   :  { %v794_v52 = vpop.f32.mrb[10].mxu0 }
 0x757   :  { %v960_v30 = vpop.f32.mrb[11].mxu0  ;;  %798 = vst.msk [vmem:[#allocation3] sm:$0x3] %vm797_vm9, %v792_v50 }
 0x758   :  { %1084 = shalt.err (!%p1081_p4)
}
 0x759   :  { %s1085_s27 = scalar_lea.hbm %s1396_s8, 32 }
 0x75a   :  { %p1086_p5 = scmp.ne.s32.totalorder %s1396_s8, %s1085_s27  ;;  %p1089_p6 = scmp.lt.u32.totalorder %s1085_s27, %s1396_s8 }
 0x75c   :  { %p1091_p7 = pnand %p1089_p6, %p1086_p5 }
 0x75e   :  { %1094 = shalt.err (!%p1091_p7)
}
 0x75f   :  { %808 = dma.vmem_to_hbm [thread:$0]  %s806_s25, 32, %s1396_s8, [#allocation4]  }
 0x760   :  { %1095 = dma.done.wait [#allocation4], 32  }
 0x761   :  { %1096 = vsyncadd [#allocation4], 4294967264 }
 0x762   :  { %812 = vsyncpa [#allocation4], 1 }

</bundles_post_ra>
